<compile_context>
chip_gen: v7x
topology: tpu7x:2x2x1
jax: 0.10.0
libtpu: 0.0.40
codegen_flags: <defaults>
</compile_context>

<pallas_src>
import jax
import jax.numpy as jnp
from jax.experimental import pallas as pl
from jax.experimental.pallas import tpu as pltpu


# ---------------------------------------------------------------------------
# Kernel
# ---------------------------------------------------------------------------
def cerberus_kernel(
    state_ref, action_ref,
    w_enc_ref, b_enc_ref,
    w_dec_h_ref, w_dec_a_ref, b_dec_ref,
    out_ref,
):
    state = state_ref[...]      # [TB, d_in]   (bf16 I/O)
    action = action_ref[...]    # [TB, d_act]
    wdt = w_enc_ref.dtype       # bf16 weights

    # encoder + sigmoid (MXU bf16 inputs, f32 accumulate; elementwise in f32)
    h = jnp.dot(state.astype(wdt), w_enc_ref[...],
                preferred_element_type=jnp.float32) + b_enc_ref[...]
    rep = jax.nn.sigmoid(h)     # [TB, d_hidden] f32

    # fused decoders: rec | next | diff in one lane-dense slab [TB, n_pad]
    out = (
        jnp.dot(rep.astype(wdt), w_dec_h_ref[...],
                preferred_element_type=jnp.float32)
        + jnp.dot(action.astype(wdt), w_dec_a_ref[...],
                  preferred_element_type=jnp.float32)
        + b_dec_ref[...]
    )
    out_ref[...] = out.astype(out_ref.dtype)


# ---------------------------------------------------------------------------
# Wrapper
# ---------------------------------------------------------------------------
def _round_up(x, m):
    return ((x + m - 1) // m) * m


def _vmem_tile_bytes(shape, dtype):
    """Conservative (sublane,128)-padded VMEM size of a 2-D block."""
    itemsize = jnp.dtype(dtype).itemsize
    sublane = 8 * max(1, 4 // itemsize)          # f32: 8, bf16: 16, int8: 32
    rows = shape[0] if len(shape) == 2 else 1
    cols = shape[-1]
    return _round_up(rows, sublane) * _round_up(cols, 128) * itemsize


def cerberus_forward(state, action, kparams, *,
                     io_dtype=jnp.bfloat16,
                     out_dtype=jnp.float32,
                     max_batch_tile=512):
    """state: [B, d_in], action: [B, d_actions] -> (rec, next, diff), each [B, d_in]."""
    if state.ndim <= 1 or action.ndim <= 1:
        raise ValueError(
            "Networks expect any input to be given as a batch. "
            "For single input, provide a batch of size 1."
        )
    B, d_in = state.shape
    d_actions = action.shape[1]
    d_hidden = kparams["w_enc"].shape[1]
    n_pad = kparams["w_dec_h"].shape[1]          # 3*d_in padded to a multiple of 128

    # Half the input DMA bytes; matmul operands were already bf16 in-kernel.
    state = state.astype(io_dtype)
    action = action.astype(io_dtype)

    # Batch tile: large (kernel is HBM/step-overhead bound) but with >=2 grid
    # steps whenever B allows, so the "parallel" axis can split across v7x's
    # two TensorCores.  Block rows must be a multiple of 8 (or equal B).
    if B <= 8:
        tb = B
    else:
        tb = min(max_batch_tile, _round_up(pl.cdiv(B, 2), 8))
    grid_b = pl.cdiv(B, tb)

    def footprint(weight_bufs):
        w_bytes = sum(_vmem_tile_bytes(kparams[k].shape, kparams[k].dtype)
                      for k in ("w_enc", "b_enc", "w_dec_h", "w_dec_a", "b_dec"))
        a_bytes = (_vmem_tile_bytes((tb, d_in), io_dtype)
                   + _vmem_tile_bytes((tb, d_actions), io_dtype)
                   + _vmem_tile_bytes((tb, n_pad), out_dtype))
        return weight_bufs * w_bytes + 2 * a_bytes   # activations double-buffered

    def run(single_buffer_weights):
        if single_buffer_weights:
            resident = dict(pipeline_mode=pl.Buffered(1))  # constant index_map -> 1 buffer
            weight_bufs = 1
        else:
            resident = {}
            weight_bufs = 2
        vmem_limit = min(64 << 20,
                         max(16 << 20, 2 * footprint(weight_bufs) + (2 << 20)))
        return pl.pallas_call(
            cerberus_kernel,
            out_shape=jax.ShapeDtypeStruct((B, n_pad), out_dtype),
            grid=(grid_b,),
            in_specs=[
                pl.BlockSpec((tb, d_in), lambda i: (i, 0)),                       # state  (batch-tiled)
                pl.BlockSpec((tb, d_actions), lambda i: (i, 0)),                  # action (batch-tiled)
                pl.BlockSpec((d_in, d_hidden), lambda i: (0, 0), **resident),     # w_enc   (resident)
                pl.BlockSpec((1, d_hidden), lambda i: (0, 0), **resident),        # b_enc   (resident)
                pl.BlockSpec((d_hidden, n_pad), lambda i: (0, 0), **resident),    # w_dec_h (resident)
                pl.BlockSpec((d_actions, n_pad), lambda i: (0, 0), **resident),   # w_dec_a (resident)
                pl.BlockSpec((1, n_pad), lambda i: (0, 0), **resident),           # b_dec   (resident)
            ],
            out_specs=pl.BlockSpec((tb, n_pad), lambda i: (i, 0)),                # lane-dense slab
            compiler_params=pltpu.CompilerParams(
                dimension_semantics=("parallel",),
                vmem_limit_bytes=int(vmem_limit)),
        )(state, action,
          kparams["w_enc"], kparams["b_enc"],
          kparams["w_dec_h"], kparams["w_dec_a"], kparams["b_dec"])

    try:
        slab = run(single_buffer_weights=True)
    except Exception:
        # Some jax builds reject pipeline_mode on top-level pallas_call specs;
        # default double-buffered resident weights are functionally identical.
        slab = run(single_buffer_weights=False)

    # Static lane slices (no batch slice needed: slab is exactly [B, n_pad]).
    reconstruction = slab[:, :d_in]
    next_state_prediction = slab[:, d_in:2 * d_in]
    difference_prediction = slab[:, 2 * d_in:3 * d_in]
    return reconstruction, next_state_prediction, difference_prediction


# ---------------------------------------------------------------------------
# Parameter construction
# ---------------------------------------------------------------------------
def init_params(key, d_in, d_hidden, d_actions, dtype=jnp.float32):
    """Logical (unfused) params mimicking nn.Linear init (uniform +-1/sqrt(fan_in)).

    Weights stored pre-transposed [fan_in, fan_out]; the concat decoders are
    split into hidden-part and action-part.
    """
    keys = jax.random.split(key, 8)

    def linear(kw, kb, fan_in, fan_out):
        bound = 1.0 / jnp.sqrt(jnp.asarray(fan_in, dtype))
        w = jax.random.uniform(kw, (fan_in, fan_out), dtype, -bound, bound)
        b = jax.random.uniform(kb, (1, fan_out), dtype, -bound, bound)
        return w, b

    w_enc, b_enc = linear(keys[0], keys[1], d_in, d_hidden)
    w_rec, b_rec = linear(keys[2], keys[3], d_hidden, d_in)
    w_next, b_next = linear(keys[4], keys[5], d_hidden + d_actions, d_in)
    w_diff, b_diff = linear(keys[6], keys[7], d_hidden + d_actions, d_in)

    return {
        "w_enc": w_enc, "b_enc": b_enc,
        "w_rec": w_rec, "b_rec": b_rec,
        "w_next_h": w_next[:d_hidden], "w_next_a": w_next[d_hidden:], "b_next": b_next,
        "w_diff_h": w_diff[:d_hidden], "w_diff_a": w_diff[d_hidden:], "b_diff": b_diff,
    }


def prepare_kernel_params(params, d_in, d_hidden, d_actions,
                          weight_dtype=jnp.bfloat16):
    """Host-side fusion + lane padding + bf16 cast (one-time).

    Slab column layout is [rec | next | diff | pad]; the zero block in w_dec_a
    is what keeps the rec columns free of the action contribution — do not
    reorder columns without updating it.
    """
    n3 = 3 * d_in
    n_pad = ((n3 + 127) // 128) * 128
    pad = n_pad - n3

    w_dec_h = jnp.concatenate(
        [params["w_rec"], params["w_next_h"], params["w_diff_h"]], axis=1)
    w_dec_a = jnp.concatenate(
        [jnp.zeros((d_actions, d_in), params["w_next_a"].dtype),
         params["w_next_a"], params["w_diff_a"]], axis=1)
    b_dec = jnp.concatenate(
        [params["b_rec"], params["b_next"], params["b_diff"]], axis=1)

    w_dec_h = jnp.pad(w_dec_h, ((0, 0), (0, pad)))
    w_dec_a = jnp.pad(w_dec_a, ((0, 0), (0, pad)))
    b_dec = jnp.pad(b_dec, ((0, 0), (0, pad)))

    return {
        "w_enc": params["w_enc"].astype(weight_dtype),
        "b_enc": params["b_enc"].astype(jnp.float32),
        "w_dec_h": w_dec_h.astype(weight_dtype),
        "w_dec_a": w_dec_a.astype(weight_dtype),
        "b_dec": b_dec.astype(jnp.float32),
    }


# ---------------------------------------------------------------------------
# Demo / correctness check
# ---------------------------------------------------------------------------
if __name__ == "__main__":
    d_in, d_hidden, d_actions = 16, 32, 8

    key = jax.random.PRNGKey(0)
    k_state, k_action, k_params = jax.random.split(key, 3)
    params = init_params(k_params, d_in, d_hidden, d_actions)
    kparams = prepare_kernel_params(params, d_in, d_hidden, d_actions)

    # Pure-JAX reference with matched bf16 rounding of matmul operands
    # (same math as the PyTorch forward; biases / sigmoid in f32).
    def _bf(x):
        return x.astype(jnp.bfloat16).astype(jnp.float32)

    def reference(state, action):
        rep = jax.nn.sigmoid(_bf(state) @ _bf(params["w_enc"]) + params["b_enc"])
        rec = _bf(rep) @ _bf(params["w_rec"]) + params["b_rec"]
        nxt = (_bf(rep) @ _bf(params["w_next_h"])
               + _bf(action) @ _bf(params["w_next_a"]) + params["b_next"])
        dif = (_bf(rep) @ _bf(params["w_diff_h"])
               + _bf(action) @ _bf(params["w_diff_a"]) + params["b_diff"])
        return rec, nxt, dif

    # B=2: single full block.  B=20: two grid steps with a ragged last tile
    # (exercises the masked load/store path and the multi-step parallel grid).
    for batch in (2, 20):
        ks, ka = jax.random.split(jax.random.fold_in(key, batch))
        state = jax.random.normal(ks, (batch, d_in), jnp.float32)
        action = jax.random.normal(ka, (batch, d_actions), jnp.float32)

        rec, nxt, dif = cerberus_forward(state, action, kparams)
        jax.block_until_ready((rec, nxt, dif))

        rec_ref, nxt_ref, dif_ref = reference(state, action)
        assert rec.shape == (batch, d_in)
        assert nxt.shape == (batch, d_in)
        assert dif.shape == (batch, d_in)
        assert jnp.allclose(rec, rec_ref, atol=1e-2, rtol=1e-2)
        assert jnp.allclose(nxt, nxt_ref, atol=1e-2, rtol=1e-2)
        assert jnp.allclose(dif, dif_ref, atol=1e-2, rtol=1e-2)

    print("KERNEL_OK")
</pallas_src>

<mosaic_0001>
module attributes {stable_mosaic.version = 11 : i64} {
  func.func @cerberus_kernel(%arg0: i32, %arg1: memref<2x16xbf16, #tpu.memory_space<vmem>>, %arg2: memref<2x8xbf16, #tpu.memory_space<vmem>>, %arg3: memref<16x32xbf16, #tpu.memory_space<vmem>>, %arg4: memref<1x32xf32, #tpu.memory_space<vmem>>, %arg5: memref<32x128xbf16, #tpu.memory_space<vmem>>, %arg6: memref<8x128xbf16, #tpu.memory_space<vmem>>, %arg7: memref<1x128xf32, #tpu.memory_space<vmem>>, %arg8: memref<2x128xf32, #tpu.memory_space<vmem>>) attributes {dimension_semantics = [#tpu.dimension_semantics<parallel>], iteration_bounds = array<i64: 1>, scalar_prefetch = 0 : i64, scratch_operands = 0 : i64, tpu.core_type = #tpu.core_type<tc>, window_params = [{transform_indices = @transform_0, window_bounds = array<i64: 2, 16>}, {transform_indices = @transform_1, window_bounds = array<i64: 2, 8>}, {pipeline_mode = #tpu.pipeline_mode<synchronous>, transform_indices = @transform_2, window_bounds = array<i64: 16, 32>}, {pipeline_mode = #tpu.pipeline_mode<synchronous>, transform_indices = @transform_3, window_bounds = array<i64: 1, 32>}, {pipeline_mode = #tpu.pipeline_mode<synchronous>, transform_indices = @transform_4, window_bounds = array<i64: 32, 128>}, {pipeline_mode = #tpu.pipeline_mode<synchronous>, transform_indices = @transform_5, window_bounds = array<i64: 8, 128>}, {pipeline_mode = #tpu.pipeline_mode<synchronous>, transform_indices = @transform_6, window_bounds = array<i64: 1, 128>}, {transform_indices = @transform_7, window_bounds = array<i64: 2, 128>}]} {
    %c0 = arith.constant 0 : index
    %c0_0 = arith.constant 0 : index
    %0 = vector.load %arg1[%c0, %c0_0] : memref<2x16xbf16, #tpu.memory_space<vmem>>, vector<2x16xbf16>
    %c0_1 = arith.constant 0 : index
    %c0_2 = arith.constant 0 : index
    %1 = vector.load %arg2[%c0_1, %c0_2] : memref<2x8xbf16, #tpu.memory_space<vmem>>, vector<2x8xbf16>
    %c0_3 = arith.constant 0 : index
    %c0_4 = arith.constant 0 : index
    %2 = vector.load %arg3[%c0_3, %c0_4] : memref<16x32xbf16, #tpu.memory_space<vmem>>, vector<16x32xbf16>
    %cst = arith.constant dense<0.000000e+00> : vector<2x32xf32>
    %3 = tpu.matmul %0, %2, %cst {dimension_numbers = #tpu.dot_dimension_numbers<[1], [0], [0], [1], [0, 0, 1, 1], [], []>} : vector<2x16xbf16>, vector<16x32xbf16>, vector<2x32xf32> -> vector<2x32xf32>
    %c0_5 = arith.constant 0 : index
    %c0_6 = arith.constant 0 : index
    %4 = vector.load %arg4[%c0_5, %c0_6] : memref<1x32xf32, #tpu.memory_space<vmem>>, vector<1x32xf32>
    %5 = vector.broadcast %4 : vector<1x32xf32> to vector<2x32xf32>
    %6 = arith.addf %3, %5 : vector<2x32xf32>
    %7 = arith.negf %6 : vector<2x32xf32>
    %8 = math.exp %7 : vector<2x32xf32>
    %cst_7 = arith.constant 1.000000e+00 : f32
    %9 = vector.broadcast %cst_7 : f32 to vector<2x32xf32>
    %10 = arith.addf %9, %8 : vector<2x32xf32>
    %11 = arith.divf %9, %10 : vector<2x32xf32>
    %12 = arith.truncf %11 : vector<2x32xf32> to vector<2x32xbf16>
    %c0_8 = arith.constant 0 : index
    %c0_9 = arith.constant 0 : index
    %13 = vector.load %arg5[%c0_8, %c0_9] : memref<32x128xbf16, #tpu.memory_space<vmem>>, vector<32x128xbf16>
    %cst_10 = arith.constant dense<0.000000e+00> : vector<2x128xf32>
    %14 = tpu.matmul %12, %13, %cst_10 {dimension_numbers = #tpu.dot_dimension_numbers<[1], [0], [0], [1], [0, 0, 1, 1], [], []>} : vector<2x32xbf16>, vector<32x128xbf16>, vector<2x128xf32> -> vector<2x128xf32>
    %c0_11 = arith.constant 0 : index
    %c0_12 = arith.constant 0 : index
    %15 = vector.load %arg6[%c0_11, %c0_12] : memref<8x128xbf16, #tpu.memory_space<vmem>>, vector<8x128xbf16>
    %cst_13 = arith.constant dense<0.000000e+00> : vector<2x128xf32>
    %16 = tpu.matmul %1, %15, %cst_13 {dimension_numbers = #tpu.dot_dimension_numbers<[1], [0], [0], [1], [0, 0, 1, 1], [], []>} : vector<2x8xbf16>, vector<8x128xbf16>, vector<2x128xf32> -> vector<2x128xf32>
    %17 = arith.addf %14, %16 : vector<2x128xf32>
    %c0_14 = arith.constant 0 : index
    %c0_15 = arith.constant 0 : index
    %18 = vector.load %arg7[%c0_14, %c0_15] : memref<1x128xf32, #tpu.memory_space<vmem>>, vector<1x128xf32>
    %19 = vector.broadcast %18 : vector<1x128xf32> to vector<2x128xf32>
    %20 = arith.addf %17, %19 : vector<2x128xf32>
    %c0_16 = arith.constant 0 : index
    %c0_17 = arith.constant 0 : index
    %21 = vector.load %arg8[%c0_16, %c0_17] : memref<2x128xf32, #tpu.memory_space<vmem>>, vector<2x128xf32>
    tpu.vector_store %arg8[%c0_16, %c0_17], %20 {strides = array<i32>} : memref<2x128xf32, #tpu.memory_space<vmem>>, vector<2x128xf32>,
    return
  }
  func.func @transform_0(%arg0: i32) -> (i32, i32) {
    %c0_i32 = arith.constant 0 : i32
    %c0_i32_0 = arith.constant 0 : i32
    return %arg0, %c0_i32 : i32, i32
  }
  func.func @transform_1(%arg0: i32) -> (i32, i32) {
    %c0_i32 = arith.constant 0 : i32
    %c0_i32_0 = arith.constant 0 : i32
    return %arg0, %c0_i32 : i32, i32
  }
  func.func @transform_2(%arg0: i32) -> (i32, i32) {
    %c0_i32 = arith.constant 0 : i32
    %c0_i32_0 = arith.constant 0 : i32
    %c0_i32_1 = arith.constant 0 : i32
    return %c0_i32, %c0_i32_0 : i32, i32
  }
  func.func @transform_3(%arg0: i32) -> (i32, i32) {
    %c0_i32 = arith.constant 0 : i32
    %c0_i32_0 = arith.constant 0 : i32
    %c0_i32_1 = arith.constant 0 : i32
    return %c0_i32, %c0_i32_0 : i32, i32
  }
  func.func @transform_4(%arg0: i32) -> (i32, i32) {
    %c0_i32 = arith.constant 0 : i32
    %c0_i32_0 = arith.constant 0 : i32
    %c0_i32_1 = arith.constant 0 : i32
    return %c0_i32, %c0_i32_0 : i32, i32
  }
  func.func @transform_5(%arg0: i32) -> (i32, i32) {
    %c0_i32 = arith.constant 0 : i32
    %c0_i32_0 = arith.constant 0 : i32
    %c0_i32_1 = arith.constant 0 : i32
    return %c0_i32, %c0_i32_0 : i32, i32
  }
  func.func @transform_6(%arg0: i32) -> (i32, i32) {
    %c0_i32 = arith.constant 0 : i32
    %c0_i32_0 = arith.constant 0 : i32
    %c0_i32_1 = arith.constant 0 : i32
    return %c0_i32, %c0_i32_0 : i32, i32
  }
  func.func @transform_7(%arg0: i32) -> (i32, i32) {
    %c0_i32 = arith.constant 0 : i32
    %c0_i32_0 = arith.constant 0 : i32
    return %arg0, %c0_i32 : i32, i32
  }
}

module attributes {stable_mosaic.version = 11 : i64} {
  func.func @cerberus_kernel(%arg0: i32, %arg1: memref<2x16xbf16, #tpu.memory_space<vmem>>, %arg2: memref<2x8xbf16, #tpu.memory_space<vmem>>, %arg3: memref<16x32xbf16, #tpu.memory_space<vmem>>, %arg4: memref<1x32xf32, #tpu.memory_space<vmem>>, %arg5: memref<32x128xbf16, #tpu.memory_space<vmem>>, %arg6: memref<8x128xbf16, #tpu.memory_space<vmem>>, %arg7: memref<1x128xf32, #tpu.memory_space<vmem>>, %arg8: memref<2x128xf32, #tpu.memory_space<vmem>>) attributes {dimension_semantics = [#tpu.dimension_semantics<parallel>], iteration_bounds = array<i64: 1>, scalar_prefetch = 0 : i64, scratch_operands = 0 : i64, tpu.core_type = #tpu.core_type<tc>, window_params = [{transform_indices = @transform_0, window_bounds = array<i64: 2, 16>}, {transform_indices = @transform_1, window_bounds = array<i64: 2, 8>}, {pipeline_mode = #tpu.pipeline_mode<synchronous>, transform_indices = @transform_2, window_bounds = array<i64: 16, 32>}, {pipeline_mode = #tpu.pipeline_mode<synchronous>, transform_indices = @transform_3, window_bounds = array<i64: 1, 32>}, {pipeline_mode = #tpu.pipeline_mode<synchronous>, transform_indices = @transform_4, window_bounds = array<i64: 32, 128>}, {pipeline_mode = #tpu.pipeline_mode<synchronous>, transform_indices = @transform_5, window_bounds = array<i64: 8, 128>}, {pipeline_mode = #tpu.pipeline_mode<synchronous>, transform_indices = @transform_6, window_bounds = array<i64: 1, 128>}, {transform_indices = @transform_7, window_bounds = array<i64: 2, 128>}]} {
    %c0 = arith.constant 0 : index
    %c0_0 = arith.constant 0 : index
    %0 = vector.load %arg1[%c0, %c0_0] : memref<2x16xbf16, #tpu.memory_space<vmem>>, vector<2x16xbf16>
    %c0_1 = arith.constant 0 : index
    %c0_2 = arith.constant 0 : index
    %1 = vector.load %arg2[%c0_1, %c0_2] : memref<2x8xbf16, #tpu.memory_space<vmem>>, vector<2x8xbf16>
    %c0_3 = arith.constant 0 : index
    %c0_4 = arith.constant 0 : index
    %2 = vector.load %arg3[%c0_3, %c0_4] : memref<16x32xbf16, #tpu.memory_space<vmem>>, vector<16x32xbf16>
    %cst = arith.constant dense<0.000000e+00> : vector<2x32xf32>
    %3 = tpu.matmul %0, %2, %cst {dimension_numbers = #tpu.dot_dimension_numbers<[1], [0], [0], [1], [0, 0, 1, 1], [], []>} : vector<2x16xbf16>, vector<16x32xbf16>, vector<2x32xf32> -> vector<2x32xf32>
    %c0_5 = arith.constant 0 : index
    %c0_6 = arith.constant 0 : index
    %4 = vector.load %arg4[%c0_5, %c0_6] : memref<1x32xf32, #tpu.memory_space<vmem>>, vector<1x32xf32>
    %5 = vector.broadcast %4 : vector<1x32xf32> to vector<2x32xf32>
    %6 = arith.addf %3, %5 : vector<2x32xf32>
    %7 = arith.negf %6 : vector<2x32xf32>
    %8 = math.exp %7 : vector<2x32xf32>
    %cst_7 = arith.constant 1.000000e+00 : f32
    %9 = vector.broadcast %cst_7 : f32 to vector<2x32xf32>
    %10 = arith.addf %9, %8 : vector<2x32xf32>
    %11 = arith.divf %9, %10 : vector<2x32xf32>
    %12 = arith.truncf %11 : vector<2x32xf32> to vector<2x32xbf16>
    %c0_8 = arith.constant 0 : index
    %c0_9 = arith.constant 0 : index
    %13 = vector.load %arg5[%c0_8, %c0_9] : memref<32x128xbf16, #tpu.memory_space<vmem>>, vector<32x128xbf16>
    %cst_10 = arith.constant dense<0.000000e+00> : vector<2x128xf32>
    %14 = tpu.matmul %12, %13, %cst_10 {dimension_numbers = #tpu.dot_dimension_numbers<[1], [0], [0], [1], [0, 0, 1, 1], [], []>} : vector<2x32xbf16>, vector<32x128xbf16>, vector<2x128xf32> -> vector<2x128xf32>
    %c0_11 = arith.constant 0 : index
    %c0_12 = arith.constant 0 : index
    %15 = vector.load %arg6[%c0_11, %c0_12] : memref<8x128xbf16, #tpu.memory_space<vmem>>, vector<8x128xbf16>
    %cst_13 = arith.constant dense<0.000000e+00> : vector<2x128xf32>
    %16 = tpu.matmul %1, %15, %cst_13 {dimension_numbers = #tpu.dot_dimension_numbers<[1], [0], [0], [1], [0, 0, 1, 1], [], []>} : vector<2x8xbf16>, vector<8x128xbf16>, vector<2x128xf32> -> vector<2x128xf32>
    %17 = arith.addf %14, %16 : vector<2x128xf32>
    %c0_14 = arith.constant 0 : index
    %c0_15 = arith.constant 0 : index
    %18 = vector.load %arg7[%c0_14, %c0_15] : memref<1x128xf32, #tpu.memory_space<vmem>>, vector<1x128xf32>
    %19 = vector.broadcast %18 : vector<1x128xf32> to vector<2x128xf32>
    %20 = arith.addf %17, %19 : vector<2x128xf32>
    %c0_16 = arith.constant 0 : index
    %c0_17 = arith.constant 0 : index
    %21 = vector.load %arg8[%c0_16, %c0_17] : memref<2x128xf32, #tpu.memory_space<vmem>>, vector<2x128xf32>
    tpu.vector_store %arg8[%c0_16, %c0_17], %20 {strides = array<i32>} : memref<2x128xf32, #tpu.memory_space<vmem>>, vector<2x128xf32>,
    return
  }
  func.func @transform_0(%arg0: i32) -> (i32, i32) {
    %c0_i32 = arith.constant 0 : i32
    %c0_i32_0 = arith.constant 0 : i32
    return %arg0, %c0_i32 : i32, i32
  }
  func.func @transform_1(%arg0: i32) -> (i32, i32) {
    %c0_i32 = arith.constant 0 : i32
    %c0_i32_0 = arith.constant 0 : i32
    return %arg0, %c0_i32 : i32, i32
  }
  func.func @transform_2(%arg0: i32) -> (i32, i32) {
    %c0_i32 = arith.constant 0 : i32
    %c0_i32_0 = arith.constant 0 : i32
    %c0_i32_1 = arith.constant 0 : i32
    return %c0_i32, %c0_i32_0 : i32, i32
  }
  func.func @transform_3(%arg0: i32) -> (i32, i32) {
    %c0_i32 = arith.constant 0 : i32
    %c0_i32_0 = arith.constant 0 : i32
    %c0_i32_1 = arith.constant 0 : i32
    return %c0_i32, %c0_i32_0 : i32, i32
  }
  func.func @transform_4(%arg0: i32) -> (i32, i32) {
    %c0_i32 = arith.constant 0 : i32
    %c0_i32_0 = arith.constant 0 : i32
    %c0_i32_1 = arith.constant 0 : i32
    return %c0_i32, %c0_i32_0 : i32, i32
  }
  func.func @transform_5(%arg0: i32) -> (i32, i32) {
    %c0_i32 = arith.constant 0 : i32
    %c0_i32_0 = arith.constant 0 : i32
    %c0_i32_1 = arith.constant 0 : i32
    return %c0_i32, %c0_i32_0 : i32, i32
  }
  func.func @transform_6(%arg0: i32) -> (i32, i32) {
    %c0_i32 = arith.constant 0 : i32
    %c0_i32_0 = arith.constant 0 : i32
    %c0_i32_1 = arith.constant 0 : i32
    return %c0_i32, %c0_i32_0 : i32, i32
  }
  func.func @transform_7(%arg0: i32) -> (i32, i32) {
    %c0_i32 = arith.constant 0 : i32
    %c0_i32_0 = arith.constant 0 : i32
    return %arg0, %c0_i32 : i32, i32
  }
}

</mosaic_0001>

<bundles_post_ra>
// kernel: tpu_custom_call.1
= control target key start
LH: loop header
LB: loop body
LE: loop exit
PB: predicated region body
PF: predicated region fallthrough
CT: control target
= control target key end

     0   :  { %12 = vsyncpa [#allocation3], 0  ;;  %s528_s0 = inlined_call_operand.hbm [shape: bf16[2,16], index: 0, kind: input, shape index: {}]   ;;  %s529_s1 = inlined_call_operand.vmem [shape: bf16[2,8], index: 1, kind: input, shape index: {}]   ;;  %s530_s2 = inlined_call_operand.hbm [shape: bf16[16,32], index: 2, kind: input, shape index: {}]   ;;  %s531_s3 = inlined_call_operand.vmem [shape: f32[1,32], index: 3, kind: input, shape index: {}]   ;;  %s532_s4 = inlined_call_operand.hbm [shape: bf16[32,128], index: 4, kind: input, shape index: {}]   ;;  %s533_s5 = inlined_call_operand.vmem [shape: bf16[8,128], index: 5, kind: input, shape index: {}]   ;;  %s534_s6 = inlined_call_operand.vmem [shape: f32[1,128], index: 6, kind: input, shape index: {}]   ;;  %s535_s7 = inlined_call_operand.hbm [shape: f32[2,128], index: 7, kind: output, shape index: {}]  }
   0x1   :  { %13 = vsyncpa [#allocation6], 0 }
   0x2   :  { %14 = vsyncpa [#allocation4], 0  ;;  %s414_s24 = smov [#allocation5]   ;;  %s320_s28 = scalar_lea.hbm %s530_s2, 128 }
   0x3   :  { %s32_s25 = sshll.u32 %s414_s24, 4  ;;  %p321_p0 = scmp.ne.s32.totalorder %s530_s2, %s320_s28  ;;  %s33_s25 = int_to_ptr.vmem [resolvable:$true] %s32_s25 }
   0x4   :  { %p324_p1 = scmp.lt.u32.totalorder %s320_s28, %s530_s2 }
   0x6   :  { %p326_p2 = pnand %p324_p1, %p321_p0 }
   0x8   :  { %329 = shalt.err (!%p326_p2)
}
   0x9   :  { %s330_s10 = scalar_lea.vmem %s33_s25, 128  ;;  %p335_p4 = scmp.lt.s32.totalorder %s33_s25, %s33_s25 }
   0xa   :  { %p331_p3 = scmp.ne.s32.totalorder %s33_s25, %s330_s10  ;;  %p336_p5 = scmp.lt.s32.totalorder %s330_s10, %s330_s10 }
   0xc   :  { %p337_p6 = por %p336_p5, %p335_p4 }
   0xe   :  { %p338_p7 = pnand %p337_p6, %p331_p3 }
  0x10   :  { %341 = shalt.err (!%p338_p7)
}
  0x11   :  { %s415_s11 = smov 64   ;;  %s416_s12 = smov 4  }
  0x12   :  { %38 = dma.hbm_to_vmem [thread:$0]  %s530_s2, 128, %s33_s25, [#allocation6], %s415_s11, %s415_s11, %s416_s12  }
  0x13   :  { %s417_s15 = smov [#allocation2]   ;;  %s418_s17 = smov [#allocation7]  }
  0x14   :  { %s21_s16 = sshll.u32 %s417_s15, 4  ;;  %s46_s18 = sshll.u32 %s418_s17, 4  ;;  %s22_s16 = int_to_ptr.vmem [resolvable:$true] %s21_s16  ;;  %s47_s18 = int_to_ptr.vmem [resolvable:$true] %s46_s18 }
  0x15   :  { %s342_s21 = scalar_lea.hbm %s528_s0, 16 }
  0x16   :  { %p343_p8 = scmp.ne.s32.totalorder %s528_s0, %s342_s21  ;;  %p346_p9 = scmp.lt.u32.totalorder %s342_s21, %s528_s0 }
  0x18   :  { %p348_p10 = pnand %p346_p9, %p343_p8 }
  0x1a   :  { %351 = shalt.err (!%p348_p10)
}
  0x1b   :  { %s352_s2 = scalar_lea.vmem %s22_s16, 16  ;;  %s356_s25 = scalar_lea.vmem %s22_s16, 32 }
  0x1c   :  { %p353_p11 = scmp.ne.s32.totalorder %s22_s16, %s352_s2  ;;  %p357_p12 = scmp.lt.s32.totalorder %s22_s16, %s22_s16 }
  0x1d   :  { %p358_p13 = scmp.lt.s32.totalorder %s356_s25, %s352_s2 }
  0x1f   :  { %p359_p0 = por %p358_p13, %p357_p12 }
  0x21   :  { %p360_p1 = pnand %p359_p0, %p353_p11 }
  0x23   :  { %363 = shalt.err (!%p360_p1)
}
  0x24   :  { %24 = dma.hbm_to_vmem [thread:$0]  %s528_s0, 16, %s22_s16, [#allocation3]  }
  0x25   :  { %s364_s8 = scalar_lea.hbm %s532_s4, 256 }
  0x26   :  { %p365_p2 = scmp.ne.s32.totalorder %s532_s4, %s364_s8  ;;  %p368_p3 = scmp.lt.u32.totalorder %s364_s8, %s532_s4 }
  0x28   :  { %p370_p4 = pnand %p368_p3, %p365_p2 }
  0x2a   :  { %373 = shalt.err (!%p370_p4)
}
  0x2b   :  { %s374_s15 = scalar_lea.vmem %s47_s18, 256  ;;  %p379_p6 = scmp.lt.s32.totalorder %s47_s18, %s47_s18 }
  0x2c   :  { %p375_p5 = scmp.ne.s32.totalorder %s47_s18, %s374_s15  ;;  %p380_p7 = scmp.lt.s32.totalorder %s374_s15, %s374_s15 }
  0x2e   :  { %p381_p8 = por %p380_p7, %p379_p6 }
  0x30   :  { %p382_p9 = pnand %p381_p8, %p375_p5 }
  0x32   :  { %385 = shalt.err (!%p382_p9)
}
  0x33   :  { %52 = dma.hbm_to_vmem [thread:$0]  %s532_s4, 256, %s47_s18, [#allocation6], %s415_s11, %s415_s11, %s416_s12  }
  0x34   :  { %408 = dma.done.wait [#allocation3], 16  }
  0x35   :  { %409 = vsyncadd [#allocation3], 4294967280 }
  0x36   :  { %410 = dma.done.wait [#allocation6], 384  }
  0x37   :  { %411 = vsyncadd [#allocation6], 4294966912  ;;  %v419_v0 = vmov 0.0   ;;  %vm420_vm0 = vmmov 0   ;;  %v313_v1 = vld [vmem:[#allocation5] sm:$0xff]   ;;  %vm84_vm1 = vcmask 130048  }
  0x38   :  { %285 = vmatprep.subr.bf16.mxu0 %v419_v0  ;;  %287 = vmatprep.mubr.msk.bf16.mxu0 %vm420_vm0, %v419_v0  ;;  %v67_v2 = vld [vmem:[#allocation2] sm:$0x1]  ;;  %v314_v3 = vld [vmem:[#allocation7] sm:$0xff]   ;;  %v139_v4 = vld [vmem:[%s533_s5] sm:$0xf]  ;;  %vm144_vm2 = vcmask 1043456  }
  0x39   :  { %291 = vmatprep.subr.bf16.mxu1 %v419_v0  ;;  %293 = vmatprep.mubr.msk.bf16.mxu1 %vm420_vm0, %v419_v0  ;;  %v146_v5 = vsel %vm144_vm2, %v139_v4, 0  ;;  %v315_v6 = vld [vmem:[#allocation7 + $0x8] sm:$0xff]   ;;  %vm140_vm3 = vcmask 64512   ;;  %vm200_vm4 = vcmask 261120   ;;  %s421_s5 = smov [#allocation8]  }
  0x3a   :  { %286 = vmatpush3.bf16.msra.mxu0 %v313_v1  ;;  %292 = vmatpush3.bf16.msra.mxu1 %v146_v5  ;;  %v68_v7 = vld [vmem:[%s529_s1] sm:$0x1]  ;;  %s259_s20 = sshll.u32 %s421_s5, 4  ;;  %s260_s20 = int_to_ptr.vmem [resolvable:$true] %s259_s20 }
  0x3b   :  { %297 = vmatprep.subr.bf16.mxu0 %v419_v0  ;;  %v269_v8 = vld [vmem:[%s531_s3] ss:$0 sm:$0xff]  ;;  %s386_s21 = scalar_lea.vmem %s260_s20, 32  ;;  %p391_p11 = scmp.lt.s32.totalorder %s260_s20, %s260_s20 }
  0x3c   :  { %v277_v24 = vld [vmem:[%s534_s6] ss:$0 sm:$0xff]  ;;  %p387_p10 = scmp.ne.s32.totalorder %s260_s20, %s386_s21  ;;  %p392_p12 = scmp.lt.s32.totalorder %s386_s21, %s386_s21 }
  0x3d   :  { %288 = vmatmul.mubr.msk.bf16.vlgmr.msra.gmra.mrb[0].mxu0 %vm84_vm1, %v67_v2  ;;  %294 = vmatmul.mubr.msk.bf16.vlgmr.msra.gmra.mrb[0].mxu1 %vm140_vm3, %v68_v7 }
  0x3e   :  { %301 = vmatprep.mubr.msk.bf16.mxu0 %vm420_vm0, %v419_v0  ;;  %298 = vmatpush3.bf16.msra.mxu0 %v314_v3  ;;  %p393_p13 = por %p392_p12, %p391_p11 }
  0x3f   :  { %299 = vmatprep.subr.bf16.mxu0 %v419_v0 }
  0x40   :  { %p394_p0 = pnand %p393_p13, %p387_p10 }
  0x42   :  { %300 = vmatpush3.bf16.msra.mxu0 %v315_v6 }
 0x110   :  { %v122_v9 = vpop.f32.mrb[0].mxu0  ;;  %v182_v19 = vpop.f32.mrb[0].mxu1 }
 0x111   :  { %v123_v10 = vadd.f32 %v269_v8, %v122_v9  ;;  %v289_v11 = vpop.f32.mrb[1].mxu0  ;;  %v295_v20 = vpop.f32.mrb[1].mxu1 }
 0x112   :  { %v125_v12 = vpop.f32.mrb[2].mxu0  ;;  %v185_v21 = vpop.f32.mrb[2].mxu1 }
 0x113   :  { %v272_v13 = vmul.f32 -1.442695, %v123_v10  ;;  %v290_v14 = vpop.f32.mrb[3].mxu0  ;;  %v296_v22 = vpop.f32.mrb[3].mxu1 }
 0x115   :  { %316 = vpow2.f32 %v272_v13 }
 0x11f   :  { %v317_v15 = vpop.eup %316 }
 0x120   :  { %v131_v16 = vadd.f32 1.0, %v317_v15 }
 0x122   :  { %318 = vrcp.f32 %v131_v16 }
 0x12c   :  { %v319_v17 = vpop.eup %318 }
 0x12d   :  { %v134_v18 = vpack.c.bf16 %v319_v17, %v319_v17 }
 0x12f   :  { %302 = vmatmul.mubr.msk.bf16.vlgmr.msra.gmra.mrb[4].mxu0 %vm200_vm4, %v134_v18 }
 0x202   :  { %v238_v23 = vpop.f32.mrb[4].mxu0 }
 0x203   :  { %v239_v25 = vadd.f32 %v238_v23, %v182_v19  ;;  %v303_v26 = vpop.f32.mrb[5].mxu0 }
 0x204   :  { %v241_v27 = vpop.f32.mrb[6].mxu0 }
 0x205   :  { %v251_v28 = vadd.f32 %v277_v24, %v239_v25  ;;  %v304_v29 = vpop.f32.mrb[7].mxu0 }
 0x207   :  { %252 = vst [vmem:[#allocation8] sm:$0x3] %v251_v28 }
 0x208   :  { %397 = shalt.err (!%p394_p0)
}
 0x209   :  { %s398_s6 = scalar_lea.hbm %s535_s7, 32 }
 0x20a   :  { %p399_p1 = scmp.ne.s32.totalorder %s535_s7, %s398_s6  ;;  %p402_p2 = scmp.lt.u32.totalorder %s398_s6, %s535_s7 }
 0x20c   :  { %p404_p3 = pnand %p402_p2, %p399_p1 }
 0x20e   :  { %407 = shalt.err (!%p404_p3)
}
 0x20f   :  { %262 = dma.vmem_to_hbm [thread:$0]  %s260_s20, 32, %s535_s7, [#allocation4]  }
 0x210   :  { %412 = dma.done.wait [#allocation4], 32  }
 0x211   :  { %413 = vsyncadd [#allocation4], 4294967264 }
 0x212   :  { %266 = vsyncpa [#allocation3], 1 }
 0x213   :  { %267 = vsyncpa [#allocation6], 1 }
 0x214   :  { %268 = vsyncpa [#allocation4], 1 }

// kernel: tpu_custom_call.1
= control target key start
LH: loop header
LB: loop body
LE: loop exit
PB: predicated region body
PF: predicated region fallthrough
CT: control target
= control target key end

     0   :  { %12 = vsyncpa [#allocation3], 0  ;;  %s528_s0 = inlined_call_operand.hbm [shape: bf16[2,16], index: 0, kind: input, shape index: {}]   ;;  %s529_s1 = inlined_call_operand.vmem [shape: bf16[2,8], index: 1, kind: input, shape index: {}]   ;;  %s530_s2 = inlined_call_operand.hbm [shape: bf16[16,32], index: 2, kind: input, shape index: {}]   ;;  %s531_s3 = inlined_call_operand.vmem [shape: f32[1,32], index: 3, kind: input, shape index: {}]   ;;  %s532_s4 = inlined_call_operand.hbm [shape: bf16[32,128], index: 4, kind: input, shape index: {}]   ;;  %s533_s5 = inlined_call_operand.vmem [shape: bf16[8,128], index: 5, kind: input, shape index: {}]   ;;  %s534_s6 = inlined_call_operand.vmem [shape: f32[1,128], index: 6, kind: input, shape index: {}]   ;;  %s535_s7 = inlined_call_operand.hbm [shape: f32[2,128], index: 7, kind: output, shape index: {}]  }
   0x1   :  { %13 = vsyncpa [#allocation6], 0 }
   0x2   :  { %14 = vsyncpa [#allocation4], 0  ;;  %s414_s24 = smov [#allocation5]   ;;  %s320_s28 = scalar_lea.hbm %s530_s2, 128 }
   0x3   :  { %s32_s25 = sshll.u32 %s414_s24, 4  ;;  %p321_p0 = scmp.ne.s32.totalorder %s530_s2, %s320_s28  ;;  %s33_s25 = int_to_ptr.vmem [resolvable:$true] %s32_s25 }
   0x4   :  { %p324_p1 = scmp.lt.u32.totalorder %s320_s28, %s530_s2 }
   0x6   :  { %p326_p2 = pnand %p324_p1, %p321_p0 }
   0x8   :  { %329 = shalt.err (!%p326_p2)
}
   0x9   :  { %s330_s10 = scalar_lea.vmem %s33_s25, 128  ;;  %p335_p4 = scmp.lt.s32.totalorder %s33_s25, %s33_s25 }
   0xa   :  { %p331_p3 = scmp.ne.s32.totalorder %s33_s25, %s330_s10  ;;  %p336_p5 = scmp.lt.s32.totalorder %s330_s10, %s330_s10 }
   0xc   :  { %p337_p6 = por %p336_p5, %p335_p4 }
   0xe   :  { %p338_p7 = pnand %p337_p6, %p331_p3 }
  0x10   :  { %341 = shalt.err (!%p338_p7)
}
  0x11   :  { %s415_s11 = smov 64   ;;  %s416_s12 = smov 4  }
  0x12   :  { %38 = dma.hbm_to_vmem [thread:$0]  %s530_s2, 128, %s33_s25, [#allocation6], %s415_s11, %s415_s11, %s416_s12  }
  0x13   :  { %s417_s15 = smov [#allocation2]   ;;  %s418_s17 = smov [#allocation7]  }
  0x14   :  { %s21_s16 = sshll.u32 %s417_s15, 4  ;;  %s46_s18 = sshll.u32 %s418_s17, 4  ;;  %s22_s16 = int_to_ptr.vmem [resolvable:$true] %s21_s16  ;;  %s47_s18 = int_to_ptr.vmem [resolvable:$true] %s46_s18 }
  0x15   :  { %s342_s21 = scalar_lea.hbm %s528_s0, 16 }
  0x16   :  { %p343_p8 = scmp.ne.s32.totalorder %s528_s0, %s342_s21  ;;  %p346_p9 = scmp.lt.u32.totalorder %s342_s21, %s528_s0 }
  0x18   :  { %p348_p10 = pnand %p346_p9, %p343_p8 }
  0x1a   :  { %351 = shalt.err (!%p348_p10)
}
  0x1b   :  { %s352_s2 = scalar_lea.vmem %s22_s16, 16  ;;  %s356_s25 = scalar_lea.vmem %s22_s16, 32 }
  0x1c   :  { %p353_p11 = scmp.ne.s32.totalorder %s22_s16, %s352_s2  ;;  %p357_p12 = scmp.lt.s32.totalorder %s22_s16, %s22_s16 }
  0x1d   :  { %p358_p13 = scmp.lt.s32.totalorder %s356_s25, %s352_s2 }
  0x1f   :  { %p359_p0 = por %p358_p13, %p357_p12 }
  0x21   :  { %p360_p1 = pnand %p359_p0, %p353_p11 }
  0x23   :  { %363 = shalt.err (!%p360_p1)
}
  0x24   :  { %24 = dma.hbm_to_vmem [thread:$0]  %s528_s0, 16, %s22_s16, [#allocation3]  }
  0x25   :  { %s364_s8 = scalar_lea.hbm %s532_s4, 256 }
  0x26   :  { %p365_p2 = scmp.ne.s32.totalorder %s532_s4, %s364_s8  ;;  %p368_p3 = scmp.lt.u32.totalorder %s364_s8, %s532_s4 }
  0x28   :  { %p370_p4 = pnand %p368_p3, %p365_p2 }
  0x2a   :  { %373 = shalt.err (!%p370_p4)
}
  0x2b   :  { %s374_s15 = scalar_lea.vmem %s47_s18, 256  ;;  %p379_p6 = scmp.lt.s32.totalorder %s47_s18, %s47_s18 }
  0x2c   :  { %p375_p5 = scmp.ne.s32.totalorder %s47_s18, %s374_s15  ;;  %p380_p7 = scmp.lt.s32.totalorder %s374_s15, %s374_s15 }
  0x2e   :  { %p381_p8 = por %p380_p7, %p379_p6 }
  0x30   :  { %p382_p9 = pnand %p381_p8, %p375_p5 }
  0x32   :  { %385 = shalt.err (!%p382_p9)
}
  0x33   :  { %52 = dma.hbm_to_vmem [thread:$0]  %s532_s4, 256, %s47_s18, [#allocation6], %s415_s11, %s415_s11, %s416_s12  }
  0x34   :  { %408 = dma.done.wait [#allocation3], 16  }
  0x35   :  { %409 = vsyncadd [#allocation3], 4294967280 }
  0x36   :  { %410 = dma.done.wait [#allocation6], 384  }
  0x37   :  { %411 = vsyncadd [#allocation6], 4294966912  ;;  %v419_v0 = vmov 0.0   ;;  %vm420_vm0 = vmmov 0   ;;  %v313_v1 = vld [vmem:[#allocation5] sm:$0xff]   ;;  %vm84_vm1 = vcmask 130048  }
  0x38   :  { %285 = vmatprep.subr.bf16.mxu0 %v419_v0  ;;  %287 = vmatprep.mubr.msk.bf16.mxu0 %vm420_vm0, %v419_v0  ;;  %v67_v2 = vld [vmem:[#allocation2] sm:$0x1]  ;;  %v314_v3 = vld [vmem:[#allocation7] sm:$0xff]   ;;  %v139_v4 = vld [vmem:[%s533_s5] sm:$0xf]  ;;  %vm144_vm2 = vcmask 1043456  }
  0x39   :  { %291 = vmatprep.subr.bf16.mxu1 %v419_v0  ;;  %293 = vmatprep.mubr.msk.bf16.mxu1 %vm420_vm0, %v419_v0  ;;  %v146_v5 = vsel %vm144_vm2, %v139_v4, 0  ;;  %v315_v6 = vld [vmem:[#allocation7 + $0x8] sm:$0xff]   ;;  %vm140_vm3 = vcmask 64512   ;;  %vm200_vm4 = vcmask 261120   ;;  %s421_s5 = smov [#allocation8]  }
  0x3a   :  { %286 = vmatpush3.bf16.msra.mxu0 %v313_v1  ;;  %292 = vmatpush3.bf16.msra.mxu1 %v146_v5  ;;  %v68_v7 = vld [vmem:[%s529_s1] sm:$0x1]  ;;  %s259_s20 = sshll.u32 %s421_s5, 4  ;;  %s260_s20 = int_to_ptr.vmem [resolvable:$true] %s259_s20 }
  0x3b   :  { %297 = vmatprep.subr.bf16.mxu0 %v419_v0  ;;  %v269_v8 = vld [vmem:[%s531_s3] ss:$0 sm:$0xff]  ;;  %s386_s21 = scalar_lea.vmem %s260_s20, 32  ;;  %p391_p11 = scmp.lt.s32.totalorder %s260_s20, %s260_s20 }
  0x3c   :  { %v277_v24 = vld [vmem:[%s534_s6] ss:$0 sm:$0xff]  ;;  %p387_p10 = scmp.ne.s32.totalorder %s260_s20, %s386_s21  ;;  %p392_p12 = scmp.lt.s32.totalorder %s386_s21, %s386_s21 }
  0x3d   :  { %288 = vmatmul.mubr.msk.bf16.vlgmr.msra.gmra.mrb[0].mxu0 %vm84_vm1, %v67_v2  ;;  %294 = vmatmul.mubr.msk.bf16.vlgmr.msra.gmra.mrb[0].mxu1 %vm140_vm3, %v68_v7 }
  0x3e   :  { %301 = vmatprep.mubr.msk.bf16.mxu0 %vm420_vm0, %v419_v0  ;;  %298 = vmatpush3.bf16.msra.mxu0 %v314_v3  ;;  %p393_p13 = por %p392_p12, %p391_p11 }
  0x3f   :  { %299 = vmatprep.subr.bf16.mxu0 %v419_v0 }
  0x40   :  { %p394_p0 = pnand %p393_p13, %p387_p10 }
  0x42   :  { %300 = vmatpush3.bf16.msra.mxu0 %v315_v6 }
 0x110   :  { %v122_v9 = vpop.f32.mrb[0].mxu0  ;;  %v182_v19 = vpop.f32.mrb[0].mxu1 }
 0x111   :  { %v123_v10 = vadd.f32 %v269_v8, %v122_v9  ;;  %v289_v11 = vpop.f32.mrb[1].mxu0  ;;  %v295_v20 = vpop.f32.mrb[1].mxu1 }
 0x112   :  { %v125_v12 = vpop.f32.mrb[2].mxu0  ;;  %v185_v21 = vpop.f32.mrb[2].mxu1 }
 0x113   :  { %v272_v13 = vmul.f32 -1.442695, %v123_v10  ;;  %v290_v14 = vpop.f32.mrb[3].mxu0  ;;  %v296_v22 = vpop.f32.mrb[3].mxu1 }
 0x115   :  { %316 = vpow2.f32 %v272_v13 }
 0x11f   :  { %v317_v15 = vpop.eup %316 }
 0x120   :  { %v131_v16 = vadd.f32 1.0, %v317_v15 }
 0x122   :  { %318 = vrcp.f32 %v131_v16 }
 0x12c   :  { %v319_v17 = vpop.eup %318 }
 0x12d   :  { %v134_v18 = vpack.c.bf16 %v319_v17, %v319_v17 }
 0x12f   :  { %302 = vmatmul.mubr.msk.bf16.vlgmr.msra.gmra.mrb[4].mxu0 %vm200_vm4, %v134_v18 }
 0x202   :  { %v238_v23 = vpop.f32.mrb[4].mxu0 }
 0x203   :  { %v239_v25 = vadd.f32 %v238_v23, %v182_v19  ;;  %v303_v26 = vpop.f32.mrb[5].mxu0 }
 0x204   :  { %v241_v27 = vpop.f32.mrb[6].mxu0 }
 0x205   :  { %v251_v28 = vadd.f32 %v277_v24, %v239_v25  ;;  %v304_v29 = vpop.f32.mrb[7].mxu0 }
 0x207   :  { %252 = vst [vmem:[#allocation8] sm:$0x3] %v251_v28 }
 0x208   :  { %397 = shalt.err (!%p394_p0)
}
 0x209   :  { %s398_s6 = scalar_lea.hbm %s535_s7, 32 }
 0x20a   :  { %p399_p1 = scmp.ne.s32.totalorder %s535_s7, %s398_s6  ;;  %p402_p2 = scmp.lt.u32.totalorder %s398_s6, %s535_s7 }
 0x20c   :  { %p404_p3 = pnand %p402_p2, %p399_p1 }
 0x20e   :  { %407 = shalt.err (!%p404_p3)
}
 0x20f   :  { %262 = dma.vmem_to_hbm [thread:$0]  %s260_s20, 32, %s535_s7, [#allocation4]  }
 0x210   :  { %412 = dma.done.wait [#allocation4], 32  }
 0x211   :  { %413 = vsyncadd [#allocation4], 4294967264 }
 0x212   :  { %266 = vsyncpa [#allocation3], 1 }
 0x213   :  { %267 = vsyncpa [#allocation6], 1 }
 0x214   :  { %268 = vsyncpa [#allocation4], 1 }

</bundles_post_ra>
